<compile_context>
chip_gen: v6e
topology: v6e:2x2x1
jax: 0.10.0
libtpu: 0.0.40
codegen_flags: <defaults>
</compile_context>

<pallas_src>
import jax
import jax.numpy as jnp
from jax.experimental import pallas as pl
from jax.experimental.pallas import tpu as pltpu


def _pixel_preprocess_kernel(x_ref, o_ref):
    # Elementwise: y = x / 255 - 0.5 (multiply by compile-time reciprocal).
    x = x_ref[...].astype(jnp.float32)
    o_ref[...] = (x * (1.0 / 255.0) - 0.5).astype(o_ref.dtype)


def pixel_preprocess(x, *, row_tile: int = 512, max_lane: int = 2048):
    """Normalize pixel observations to [-0.5, 0.5]. Works on any shape."""
    shp = x.shape
    out_dtype = x.dtype if jnp.issubdtype(x.dtype, jnp.floating) else jnp.float32

    total = 1
    for s in shp:
        total *= int(s)
    flat = x.reshape(-1)

    LANE = 128
    if total % LANE == 0:
        # Lane-dense factorization: last dim is the largest multiple of 128
        # (capped) that divides the element count.
        lane_dim = LANE
        while (lane_dim * 2) <= max_lane and total % (lane_dim * 2) == 0:
            lane_dim *= 2
        rows = total // lane_dim
    else:
        # Fallback: a single full-extent block (block shape == array shape is
        # always legal). Only hit for element counts not divisible by 128.
        lane_dim = total
        rows = 1
    x2 = flat.reshape(rows, lane_dim)

    # Row tile: as large as possible, sublane-aligned unless it is the full
    # row extent (full-extent blocks are always legal).
    tm = min(row_tile, rows)
    if tm != rows:
        tm = max(8, (tm // 8) * 8)
    grid = (pl.cdiv(rows, tm),)

    out2 = pl.pallas_call(
        _pixel_preprocess_kernel,
        out_shape=jax.ShapeDtypeStruct((rows, lane_dim), out_dtype),
        grid_spec=pltpu.PrefetchScalarGridSpec(
            num_scalar_prefetch=0,
            grid=grid,
            in_specs=[pl.BlockSpec((tm, lane_dim), lambda i: (i, 0))],
            out_specs=pl.BlockSpec((tm, lane_dim), lambda i: (i, 0)),
        ),
        compiler_params=pltpu.CompilerParams(
            dimension_semantics=("parallel",),
            vmem_limit_bytes=48 * 1024 * 1024,
        ),
    )(x2)

    return out2.reshape(shp)


if __name__ == "__main__":
    # PixelPreprocess has no parameters. Small pixel-like input: (B, C, H, W).
    key = jax.random.PRNGKey(0)
    x = jax.random.uniform(
        key, (2, 4, 16, 16), dtype=jnp.float32, minval=0.0, maxval=255.0)

    y = pixel_preprocess(x)
    y = jax.block_until_ready(y)

    # Reference: plain-JAX semantics of the PyTorch module.
    ref = x / 255.0 - 0.5
    assert y.shape == x.shape and y.dtype == ref.dtype
    assert jnp.allclose(y, ref, atol=1e-6, rtol=1e-6)
    assert float(jnp.min(y)) >= -0.5 - 1e-6 and float(jnp.max(y)) <= 0.5 + 1e-6

    print("KERNEL_OK")
</pallas_src>

<mosaic_0001>
module attributes {stable_mosaic.version = 11 : i64} {
  func.func @_pixel_preprocess_kernel(%arg0: i32, %arg1: memref<1x2048xf32, #tpu.memory_space<vmem>>, %arg2: memref<1x2048xf32, #tpu.memory_space<vmem>>) attributes {dimension_semantics = [#tpu.dimension_semantics<parallel>], iteration_bounds = array<i64: 1>, scalar_prefetch = 0 : i64, scratch_operands = 0 : i64, tpu.core_type = #tpu.core_type<tc>, window_params = [{transform_indices = @transform_0, window_bounds = array<i64: 1, 2048>}, {transform_indices = @transform_1, window_bounds = array<i64: 1, 2048>}]} {
    %c0 = arith.constant 0 : index
    %c0_0 = arith.constant 0 : index
    %0 = vector.load %arg1[%c0, %c0_0] : memref<1x2048xf32, #tpu.memory_space<vmem>>, vector<1x2048xf32>
    %cst = arith.constant 0.00392156886 : f32
    %1 = vector.broadcast %cst : f32 to vector<1x2048xf32>
    %2 = arith.mulf %0, %1 : vector<1x2048xf32>
    %cst_1 = arith.constant 5.000000e-01 : f32
    %3 = vector.broadcast %cst_1 : f32 to vector<1x2048xf32>
    %4 = arith.subf %2, %3 : vector<1x2048xf32>
    %c0_2 = arith.constant 0 : index
    %c0_3 = arith.constant 0 : index
    %5 = vector.load %arg2[%c0_2, %c0_3] : memref<1x2048xf32, #tpu.memory_space<vmem>>, vector<1x2048xf32>
    tpu.vector_store %arg2[%c0_2, %c0_3], %4 {strides = array<i32>} : memref<1x2048xf32, #tpu.memory_space<vmem>>, vector<1x2048xf32>,
    return
  }
  func.func @transform_0(%arg0: i32) -> (i32, i32) {
    %c0_i32 = arith.constant 0 : i32
    %c0_i32_0 = arith.constant 0 : i32
    return %arg0, %c0_i32 : i32, i32
  }
  func.func @transform_1(%arg0: i32) -> (i32, i32) {
    %c0_i32 = arith.constant 0 : i32
    %c0_i32_0 = arith.constant 0 : i32
    return %arg0, %c0_i32 : i32, i32
  }
}

</mosaic_0001>

<bundles_post_ra>
// kernel: tpu_custom_call.1
= control target key start
LH: loop header
LB: loop body
LE: loop exit
PB: predicated region body
PF: predicated region fallthrough
CT: control target
= control target key end

     0   :  { %6 = vsyncpa [#allocation3], 0  ;;  %s110_s0 = inlined_call_operand.hbm [shape: f32[1,2048], index: 0, kind: input, shape index: {}]   ;;  %s111_s1 = inlined_call_operand.hbm [shape: f32[1,2048], index: 1, kind: output, shape index: {}]  }
   0x1   :  { %7 = vsyncpa [#allocation4], 0  ;;  %s92_s6 = smov [#allocation2]  }
   0x2   :  { %s14_s7 = sshll.u32 %s92_s6, 4  ;;  %s15_s7 = int_to_ptr.vmem [resolvable:$true] %s14_s7 }
   0x3   :  { %s56_s8 = scalar_lea.vmem %s15_s7, 256  ;;  %p61_p1 = scmp.lt.s32.totalorder %s15_s7, %s15_s7 }
   0x4   :  { %p57_p0 = scmp.ne.s32.totalorder %s15_s7, %s56_s8  ;;  %p62_p2 = scmp.lt.s32.totalorder %s56_s8, %s56_s8 }
   0x6   :  { %p63_p3 = por %p62_p2, %p61_p1 }
   0x8   :  { %p64_p4 = pnand %p63_p3, %p57_p0 }
   0xa   :  { %67 = shalt.err (!%p64_p4)
}
   0xb   :  { %17 = dma.hbm_to_vmem [thread:$0]  %s110_s0, 256, %s15_s7, [#allocation3]  }
   0xc   :  { %88 = dma.done.wait [#allocation3], 256  }
   0xd   :  { %89 = vsyncadd [#allocation3], 4294967040  ;;  %v21_v0 = vld [vmem:[#allocation2] sm:$0xff]  ;;  %v22_v1 = vld [vmem:[#allocation2 + $0x8] sm:$0xff]  ;;  %s93_s11 = smov [#allocation5]  }
   0xe   :  { %s35_s12 = sshll.u32 %s93_s11, 4  ;;  %v23_v2 = vmul.f32 0.003921569, %v21_v0  ;;  %v24_v3 = vmul.f32 0.003921569, %v22_v1  ;;  %s36_s12 = int_to_ptr.vmem [resolvable:$true] %s35_s12 }
   0xf   :  { %s68_s13 = scalar_lea.vmem %s36_s12, 256  ;;  %p73_p6 = scmp.lt.s32.totalorder %s36_s12, %s36_s12 }
  0x10   :  { %v44_v4 = vadd.f32 -0.5, %v23_v2  ;;  %v45_v5 = vadd.f32 -0.5, %v24_v3  ;;  %p69_p5 = scmp.ne.s32.totalorder %s36_s12, %s68_s13  ;;  %p74_p7 = scmp.lt.s32.totalorder %s68_s13, %s68_s13 }
  0x12   :  { %27 = vst [vmem:[#allocation5] sm:$0xff] %v44_v4  ;;  %28 = vst [vmem:[#allocation5 + $0x8] sm:$0xff] %v45_v5  ;;  %p75_p8 = por %p74_p7, %p73_p6 }
  0x14   :  { %p76_p9 = pnand %p75_p8, %p69_p5 }
  0x16   :  { %79 = shalt.err (!%p76_p9)
}
  0x17   :  { %38 = dma.vmem_to_hbm [thread:$0]  %s36_s12, 256, %s111_s1, [#allocation4]  }
  0x18   :  { %90 = dma.done.wait [#allocation4], 256  }
  0x19   :  { %91 = vsyncadd [#allocation4], 4294967040 }
  0x1a   :  { %42 = vsyncpa [#allocation3], 1 }
  0x1b   :  { %43 = vsyncpa [#allocation4], 1 }

</bundles_post_ra>
